<compile_context>
chip_gen: v6e
topology: v6e:2x2x1
jax: 0.10.0
libtpu: 0.0.40
codegen_flags: <defaults>
</compile_context>

<pallas_src>
import functools

import jax
import jax.numpy as jnp
import numpy as np
from jax.experimental import pallas as pl
from jax.experimental.pallas import tpu as pltpu


# --------------------------------------------------------------------------
# Kernel
# --------------------------------------------------------------------------
def _mlp_reg_kernel(x_ref, w1_ref, b1_ref, w2_ref, c_ref, out_ref):
    """One batch tile of the 2-layer MLP + regression head.

    x_ref   : (tb, Din)        bf16 (or f32)
    w1_ref  : (Din, W_h)       bf16
    b1_ref  : (8, W_h)         f32   row 0 = b1 (pad cols are zero)
    w2_ref  : (W_h, W_o)       bf16
    c_ref   : (W_o + 8, W_o)   f32   rows [0:W_o] = M (identity cols 0..P-1,
                                     wr in col P), row W_o = b2, row W_o+1 = br
    out_ref : (tb, W_o)        f32   [fea_0..fea_{P-1} | out | 0 ...]
    """
    w_o = out_ref.shape[-1]

    b1 = b1_ref[0:1, :]                    # (1, W_h)
    m = c_ref[0:w_o, :]                    # (W_o, W_o)  epilogue matrix
    b2 = c_ref[w_o:w_o + 1, :]             # (1, W_o)
    br = c_ref[w_o + 1:w_o + 2, :]         # (1, W_o)  (br at col P, zero elsewhere)

    # Layer 1: Linear + ReLU (bf16 operands, f32 accumulation; pad cols stay 0)
    h = jnp.dot(x_ref[...], w1_ref[...], preferred_element_type=jnp.float32) + b1
    h = jnp.maximum(h, 0.0).astype(w2_ref.dtype)

    # Layer 2: Linear + ReLU -> fea in cols [0:P], zeros elsewhere
    fea = jnp.dot(h, w2_ref[...], preferred_element_type=jnp.float32) + b2
    fea = jnp.maximum(fea, 0.0)

    # Regression head + slab assembly in a single lane-dense MXU matmul:
    #   slab[:, :P] = fea,  slab[:, P] = fea @ wr + br,  rest zero.
    out_ref[...] = jnp.dot(fea, m, preferred_element_type=jnp.float32) + br


# --------------------------------------------------------------------------
# Host-side wrapper
# --------------------------------------------------------------------------
def _pick_tb(B, tb):
    if tb is None:
        if B <= 128:
            tb = B                       # single grid step: overhead dominates at small B
        else:
            tb = 128                     # cap keeps f32 intermediates in vregs (v5e)
            while B % tb != 0 and tb > 8:
                tb -= 8
            if B % tb != 0:
                tb = B
    assert B % tb == 0, f"batch {B} must be divisible by batch tile {tb}"
    assert tb == B or tb % 8 == 0, "batch tile must be a multiple of 8 or the full batch"
    return tb


def _forward(x, w1p, b1p, w2p, cpack, *, P, tb):
    B, Din = x.shape
    W_h = w1p.shape[1]
    W_o = cpack.shape[1]
    tb = _pick_tb(B, tb)

    slab = pl.pallas_call(
        _mlp_reg_kernel,
        grid=(B // tb,),
        in_specs=[
            pl.BlockSpec((tb, Din), lambda i: (i, 0)),          # x: tiled over batch
            pl.BlockSpec((Din, W_h), lambda i: (0, 0)),         # W1 (replicated)
            pl.BlockSpec((8, W_h), lambda i: (0, 0)),           # b1 (replicated)
            pl.BlockSpec((W_h, W_o), lambda i: (0, 0)),         # W2 (replicated)
            pl.BlockSpec((W_o + 8, W_o), lambda i: (0, 0)),     # M / b2 / br (replicated)
        ],
        out_specs=pl.BlockSpec((tb, W_o), lambda i: (i, 0)),
        out_shape=jax.ShapeDtypeStruct((B, W_o), jnp.float32),
        compiler_params=pltpu.CompilerParams(
            dimension_semantics=("parallel",)),
    )(x.astype(w1p.dtype), w1p, b1p, w2p, cpack)

    fea = slab[:, :P]
    out = jnp.squeeze(slab[:, P:P + 1])      # torch: bias_value.squeeze()
    return out, fea


def pack_params(params, compute_dtype=jnp.bfloat16):
    """Pad / transpose / pack parameters once (hoisted out of the forward path).

    Correctness of the padded-column scheme relies on every pad region being
    zero (and ReLU(0) == 0); all padded tensors below are built from
    jnp.zeros, so that holds by construction.
    """
    f32 = jnp.float32
    w1 = jnp.asarray(params['w1'], f32)      # (Din, H)
    b1 = jnp.asarray(params['b1'], f32)      # (H,)
    w2 = jnp.asarray(params['w2'], f32)      # (H, P)
    b2 = jnp.asarray(params['b2'], f32)      # (P,)
    wr = jnp.asarray(params['wr'], f32)      # (P, 1)
    br = jnp.asarray(params['br'], f32)      # (1,)

    Din, H = w1.shape
    P = w2.shape[1]
    W_h = 128 * pl.cdiv(H, 128)              # padded hidden lane width
    W_o = 128 * pl.cdiv(P + 1, 128)          # padded output-slab width (out at col P)

    w1p = jnp.zeros((Din, W_h), compute_dtype).at[:, :H].set(w1.astype(compute_dtype))
    b1p = jnp.zeros((8, W_h), f32).at[0, :H].set(b1)
    w2p = jnp.zeros((W_h, W_o), compute_dtype).at[:H, :P].set(w2.astype(compute_dtype))

    # Epilogue matrix M (identity in cols 0..P-1, wr in col P) + b2 / br rows.
    m = jnp.zeros((W_o, W_o), f32)
    m = m.at[jnp.arange(P), jnp.arange(P)].set(1.0)
    m = m.at[:P, P].set(wr[:, 0])
    cpack = jnp.zeros((W_o + 8, W_o), f32)
    cpack = cpack.at[:W_o, :].set(m)
    cpack = cpack.at[W_o, :P].set(b2)
    cpack = cpack.at[W_o + 1, P].set(br[0])

    return {'w1': w1p, 'b1': b1p, 'w2': w2p, 'cpack': cpack, 'P': int(P)}


class PredictorMLPREG:
    """Pallas counterpart of the PyTorch Predictor_MLP_REG module."""

    def __init__(self, params, *, tb=None, compute_dtype=jnp.bfloat16):
        packed = pack_params(params, compute_dtype)
        self._tensors = (packed['w1'], packed['b1'], packed['w2'], packed['cpack'])
        self._fwd = jax.jit(functools.partial(_forward, P=packed['P'], tb=tb))

    def __call__(self, x):
        out, fea = self._fwd(x, *self._tensors)
        return out, None, fea


# --------------------------------------------------------------------------
# References & demo
# --------------------------------------------------------------------------
def _reference_f32(x, p):
    """Pure f32 JAX reference mirroring the PyTorch forward."""
    h = jnp.maximum(x @ p['w1'] + p['b1'], 0.0)
    fea = jnp.maximum(h @ p['w2'] + p['b2'], 0.0)
    out = fea @ p['wr'] + p['br']
    return jnp.squeeze(out), fea


def _reference_matched(x, p, cd=jnp.bfloat16):
    """Reference mirroring the kernel's compute dtypes (bf16 operands, f32 accumulation)."""
    h = jnp.maximum(
        jnp.dot(x.astype(cd), p['w1'].astype(cd),
                preferred_element_type=jnp.float32) + p['b1'], 0.0)
    fea = jnp.maximum(
        jnp.dot(h.astype(cd), p['w2'].astype(cd),
                preferred_element_type=jnp.float32) + p['b2'], 0.0)
    out = jnp.dot(fea, p['wr']) + p['br']
    return jnp.squeeze(out), fea


def _make_params(key, input_dim, hidden_dim, pred_fea_dim):
    """xavier_normal_-style weights (as in init_weights), zero biases."""
    def xavier(k, fan_in, fan_out):
        std = (2.0 / (fan_in + fan_out)) ** 0.5
        return (std * jax.random.normal(k, (fan_in, fan_out))).astype(jnp.float32)

    k1, k2, k3 = jax.random.split(key, 3)
    return {
        'w1': xavier(k1, input_dim, hidden_dim),
        'b1': jnp.zeros((hidden_dim,), jnp.float32),
        'w2': xavier(k2, hidden_dim, pred_fea_dim),
        'b2': jnp.zeros((pred_fea_dim,), jnp.float32),
        'wr': xavier(k3, pred_fea_dim, 1),
        'br': jnp.zeros((1,), jnp.float32),
    }


if __name__ == "__main__":
    B, input_dim, hidden_dim, pred_fea_dim = 16, 16, 32, 8

    root = jax.random.PRNGKey(0)
    k_params, k_x = jax.random.split(root)
    params = _make_params(k_params, input_dim, hidden_dim, pred_fea_dim)
    x = jax.random.normal(k_x, (B, input_dim), dtype=jnp.float32)

    model = PredictorMLPREG(params)          # packs / pads weights exactly once
    out, none_slot, fea = model(x)
    jax.block_until_ready((out, fea))

    assert none_slot is None
    assert out.shape == (B,) and fea.shape == (B, pred_fea_dim)

    # Tight check against a reference with matching compute dtypes.
    m_out, m_fea = _reference_matched(x, params)
    np.testing.assert_allclose(np.asarray(out), np.asarray(m_out), rtol=1e-2, atol=1e-2)
    np.testing.assert_allclose(np.asarray(fea), np.asarray(m_fea), rtol=1e-2, atol=1e-2)

    # Loose check against the pure-f32 reference (bounds the bf16 drift).
    f_out, f_fea = _reference_f32(x, params)
    np.testing.assert_allclose(np.asarray(out), np.asarray(f_out), rtol=5e-2, atol=5e-2)
    np.testing.assert_allclose(np.asarray(fea), np.asarray(f_fea), rtol=5e-2, atol=5e-2)

    print("KERNEL_OK")
</pallas_src>

<mosaic_0001>
module attributes {stable_mosaic.version = 11 : i64} {
  func.func @_mlp_reg_kernel(%arg0: i32, %arg1: memref<16x16xbf16, #tpu.memory_space<vmem>>, %arg2: memref<16x128xbf16, #tpu.memory_space<vmem>>, %arg3: memref<8x128xf32, #tpu.memory_space<vmem>>, %arg4: memref<128x128xbf16, #tpu.memory_space<vmem>>, %arg5: memref<136x128xf32, #tpu.memory_space<vmem>>, %arg6: memref<16x128xf32, #tpu.memory_space<vmem>>) attributes {dimension_semantics = [#tpu.dimension_semantics<parallel>], iteration_bounds = array<i64: 1>, scalar_prefetch = 0 : i64, scratch_operands = 0 : i64, tpu.core_type = #tpu.core_type<tc>, window_params = [{transform_indices = @transform_0, window_bounds = array<i64: 16, 16>}, {pipeline_mode = #tpu.pipeline_mode<synchronous>, transform_indices = @transform_1, window_bounds = array<i64: 16, 128>}, {pipeline_mode = #tpu.pipeline_mode<synchronous>, transform_indices = @transform_2, window_bounds = array<i64: 8, 128>}, {pipeline_mode = #tpu.pipeline_mode<synchronous>, transform_indices = @transform_3, window_bounds = array<i64: 128, 128>}, {pipeline_mode = #tpu.pipeline_mode<synchronous>, transform_indices = @transform_4, window_bounds = array<i64: 136, 128>}, {transform_indices = @transform_5, window_bounds = array<i64: 16, 128>}]} {
    %c0 = arith.constant 0 : index
    %c0_0 = arith.constant 0 : index
    %0 = vector.load %arg3[%c0, %c0_0] : memref<8x128xf32, #tpu.memory_space<vmem>>, vector<1x128xf32>
    %c0_1 = arith.constant 0 : index
    %c0_2 = arith.constant 0 : index
    %1 = vector.load %arg5[%c0_1, %c0_2] : memref<136x128xf32, #tpu.memory_space<vmem>>, vector<128x128xf32>
    %c128 = arith.constant 128 : index
    %c0_3 = arith.constant 0 : index
    %2 = vector.load %arg5[%c128, %c0_3] : memref<136x128xf32, #tpu.memory_space<vmem>>, vector<1x128xf32>
    %c129 = arith.constant 129 : index
    %c0_4 = arith.constant 0 : index
    %3 = vector.load %arg5[%c129, %c0_4] : memref<136x128xf32, #tpu.memory_space<vmem>>, vector<1x128xf32>
    %c0_5 = arith.constant 0 : index
    %c0_6 = arith.constant 0 : index
    %4 = vector.load %arg1[%c0_5, %c0_6] : memref<16x16xbf16, #tpu.memory_space<vmem>>, vector<16x16xbf16>
    %c0_7 = arith.constant 0 : index
    %c0_8 = arith.constant 0 : index
    %5 = vector.load %arg2[%c0_7, %c0_8] : memref<16x128xbf16, #tpu.memory_space<vmem>>, vector<16x128xbf16>
    %cst = arith.constant dense<0.000000e+00> : vector<16x128xf32>
    %6 = tpu.matmul %4, %5, %cst {dimension_numbers = #tpu.dot_dimension_numbers<[1], [0], [0], [1], [0, 0, 1, 1], [], []>} : vector<16x16xbf16>, vector<16x128xbf16>, vector<16x128xf32> -> vector<16x128xf32>
    %7 = vector.broadcast %0 : vector<1x128xf32> to vector<16x128xf32>
    %8 = arith.addf %6, %7 : vector<16x128xf32>
    %cst_9 = arith.constant 0.000000e+00 : f32
    %9 = vector.broadcast %cst_9 : f32 to vector<16x128xf32>
    %10 = arith.maximumf %8, %9 : vector<16x128xf32>
    %11 = arith.truncf %10 : vector<16x128xf32> to vector<16x128xbf16>
    %c0_10 = arith.constant 0 : index
    %c0_11 = arith.constant 0 : index
    %12 = vector.load %arg4[%c0_10, %c0_11] : memref<128x128xbf16, #tpu.memory_space<vmem>>, vector<128x128xbf16>
    %cst_12 = arith.constant dense<0.000000e+00> : vector<16x128xf32>
    %13 = tpu.matmul %11, %12, %cst_12 {dimension_numbers = #tpu.dot_dimension_numbers<[1], [0], [0], [1], [0, 0, 1, 1], [], []>} : vector<16x128xbf16>, vector<128x128xbf16>, vector<16x128xf32> -> vector<16x128xf32>
    %14 = vector.broadcast %2 : vector<1x128xf32> to vector<16x128xf32>
    %15 = arith.addf %13, %14 : vector<16x128xf32>
    %cst_13 = arith.constant 0.000000e+00 : f32
    %16 = vector.broadcast %cst_13 : f32 to vector<16x128xf32>
    %17 = arith.maximumf %15, %16 : vector<16x128xf32>
    %cst_14 = arith.constant dense<0.000000e+00> : vector<16x128xf32>
    %18 = tpu.matmul %17, %1, %cst_14 {dimension_numbers = #tpu.dot_dimension_numbers<[1], [0], [0], [1], [0, 0, 1, 1], [], []>} : vector<16x128xf32>, vector<128x128xf32>, vector<16x128xf32> -> vector<16x128xf32>
    %19 = vector.broadcast %3 : vector<1x128xf32> to vector<16x128xf32>
    %20 = arith.addf %18, %19 : vector<16x128xf32>
    %c0_15 = arith.constant 0 : index
    %c0_16 = arith.constant 0 : index
    %21 = vector.load %arg6[%c0_15, %c0_16] : memref<16x128xf32, #tpu.memory_space<vmem>>, vector<16x128xf32>
    tpu.vector_store %arg6[%c0_15, %c0_16], %20 {strides = array<i32>} : memref<16x128xf32, #tpu.memory_space<vmem>>, vector<16x128xf32>,
    return
  }
  func.func @transform_0(%arg0: i32) -> (i32, i32) {
    %c0_i32 = arith.constant 0 : i32
    %c0_i32_0 = arith.constant 0 : i32
    return %arg0, %c0_i32 : i32, i32
  }
  func.func @transform_1(%arg0: i32) -> (i32, i32) {
    %c0_i32 = arith.constant 0 : i32
    %c0_i32_0 = arith.constant 0 : i32
    %c0_i32_1 = arith.constant 0 : i32
    return %c0_i32, %c0_i32_0 : i32, i32
  }
  func.func @transform_2(%arg0: i32) -> (i32, i32) {
    %c0_i32 = arith.constant 0 : i32
    %c0_i32_0 = arith.constant 0 : i32
    %c0_i32_1 = arith.constant 0 : i32
    return %c0_i32, %c0_i32_0 : i32, i32
  }
  func.func @transform_3(%arg0: i32) -> (i32, i32) {
    %c0_i32 = arith.constant 0 : i32
    %c0_i32_0 = arith.constant 0 : i32
    %c0_i32_1 = arith.constant 0 : i32
    return %c0_i32, %c0_i32_0 : i32, i32
  }
  func.func @transform_4(%arg0: i32) -> (i32, i32) {
    %c0_i32 = arith.constant 0 : i32
    %c0_i32_0 = arith.constant 0 : i32
    %c0_i32_1 = arith.constant 0 : i32
    return %c0_i32, %c0_i32_0 : i32, i32
  }
  func.func @transform_5(%arg0: i32) -> (i32, i32) {
    %c0_i32 = arith.constant 0 : i32
    %c0_i32_0 = arith.constant 0 : i32
    return %arg0, %c0_i32 : i32, i32
  }
}

</mosaic_0001>

<bundles_post_ra>
// kernel: _forward.1
= control target key start
LH: loop header
LB: loop body
LE: loop exit
PB: predicated region body
PF: predicated region fallthrough
CT: control target
= control target key end

     0   :  { %10 = vsyncpa [#allocation3], 0  ;;  %s558_s0 = inlined_call_operand.vmem [shape: bf16[16,16], index: 0, kind: input, shape index: {}]   ;;  %s559_s1 = inlined_call_operand.vmem [shape: bf16[16,128], index: 1, kind: input, shape index: {}]   ;;  %s560_s2 = inlined_call_operand.vmem [shape: f32[8,128], index: 2, kind: input, shape index: {}]   ;;  %s561_s3 = inlined_call_operand.hbm [shape: bf16[128,128], index: 3, kind: input, shape index: {}]   ;;  %s562_s4 = inlined_call_operand.hbm [shape: f32[136,128], index: 4, kind: input, shape index: {}]   ;;  %s563_s5 = inlined_call_operand.vmem [shape: f32[16,128], index: 5, kind: output, shape index: {}]  }
   0x1   :  { %11 = vsyncpa [#allocation5], 0  ;;  %s499_s18 = smov [#allocation2]  }
   0x2   :  { %s23_s19 = sshll.u32 %s499_s18, 4  ;;  %s24_s19 = int_to_ptr.vmem [resolvable:$true] %s23_s19 }
   0x3   :  { %s463_s20 = scalar_lea.vmem %s24_s19, 1024  ;;  %p468_p1 = scmp.lt.s32.totalorder %s24_s19, %s24_s19 }
   0x4   :  { %p464_p0 = scmp.ne.s32.totalorder %s24_s19, %s463_s20  ;;  %p469_p2 = scmp.lt.s32.totalorder %s463_s20, %s463_s20 }
   0x6   :  { %p470_p3 = por %p469_p2, %p468_p1 }
   0x8   :  { %p471_p4 = pnand %p470_p3, %p464_p0 }
   0xa   :  { %474 = shalt.err (!%p471_p4)
}
   0xb   :  { %s500_s21 = smov 64   ;;  %s501_s22 = smov 4  }
   0xc   :  { %29 = dma.hbm_to_vmem [thread:$0]  %s561_s3, 1024, %s24_s19, [#allocation3], %s500_s21, %s500_s21, %s501_s22  }
   0xd   :  { %s502_s25 = smov [#allocation4]  }
   0xe   :  { %s35_s26 = sshll.u32 %s502_s25, 4  ;;  %s36_s26 = int_to_ptr.vmem [resolvable:$true] %s35_s26 }
   0xf   :  { %s483_s27 = scalar_lea.vmem %s36_s26, 2176  ;;  %p488_p6 = scmp.lt.s32.totalorder %s36_s26, %s36_s26 }
  0x10   :  { %p484_p5 = scmp.ne.s32.totalorder %s36_s26, %s483_s27  ;;  %p489_p7 = scmp.lt.s32.totalorder %s483_s27, %s483_s27 }
  0x12   :  { %p490_p8 = por %p489_p7, %p488_p6 }
  0x14   :  { %p491_p9 = pnand %p490_p8, %p484_p5 }
  0x16   :  { %494 = shalt.err (!%p491_p9)
}
  0x17   :  { %s503_s28 = smov 128   ;;  %s504_s29 = smov 8  }
  0x18   :  { %41 = dma.hbm_to_vmem [thread:$0]  %s562_s4, 2176, %s36_s26, [#allocation5], %s503_s28, %s503_s28, %s504_s29  }
  0x19   :  { %495 = dma.done.wait [#allocation3], 1024  }
  0x1a   :  { %496 = vsyncadd [#allocation3], 4294966272 }
  0x1b   :  { %497 = dma.done.wait [#allocation5], 2176  }
  0x1c   :  { %498 = vsyncadd [#allocation5], 4294965120  ;;  %v505_v0 = vmov 0.0   ;;  %vm506_vm0 = vmmov 0   ;;  %v445_v1 = vld [vmem:[%s559_s1] sm:$0xff]   ;;  %vm87_vm1 = vcmask 130048  }
  0x1d   :  { %376 = vmatprep.subr.bf16.mxu0 %v505_v0  ;;  %378 = vmatprep.mubr.msk.bf16.mxu0 %vm506_vm0, %v505_v0  ;;  %v446_v2 = vld [vmem:[%s558_s0] sm:$0xff]   ;;  %v447_v3 = vld [vmem:[#allocation2 + $0x38] sm:$0xff]   ;;  %v448_v4 = vld [vmem:[#allocation2 + $0x30] sm:$0xff]  }
  0x1e   :  { %382 = vmatprep.subr.bf16.mxu1 %v505_v0  ;;  %398 = vmatprep.mubr.msk.bf16.mxu1 %vm506_vm0, %v505_v0  ;;  %v449_v5 = vld [vmem:[#allocation2 + $0x28] sm:$0xff]   ;;  %v450_v6 = vld [vmem:[#allocation2 + $0x20] sm:$0xff]   ;;  %v451_v7 = vld [vmem:[#allocation2 + $0x18] sm:$0xff]  }
  0x1f   :  { %377 = vmatpush3.bf16.msra.mxu0 %v445_v1  ;;  %383 = vmatpush3.bf16.msra.mxu1 %v447_v3  ;;  %v452_v8 = vld [vmem:[#allocation2 + $0x10] sm:$0xff]   ;;  %v453_v9 = vld [vmem:[#allocation2 + $0x8] sm:$0xff]   ;;  %v454_v10 = vld [vmem:[#allocation2] sm:$0xff]  }
  0x20   :  { %384 = vmatprep.subr.bf16.mxu1 %v505_v0  ;;  %v65_v11 = vld [vmem:[#allocation4 + $0x78] sm:$0xff]  ;;  %v64_v12 = vld [vmem:[#allocation4 + $0x70] sm:$0xff]  ;;  %v63_v13 = vld [vmem:[#allocation4 + $0x68] sm:$0xff] }
  0x21   :  { %402 = vmatprep.subr.mxu0 %v65_v11  ;;  %v62_v14 = vld [vmem:[#allocation4 + $0x60] sm:$0xff]  ;;  %v61_v15 = vld [vmem:[#allocation4 + $0x58] sm:$0xff]  ;;  %v60_v16 = vld [vmem:[#allocation4 + $0x50] sm:$0xff] }
  0x22   :  { %379 = vmatmul.mubr.msk.bf16.vlgmr.msra.gmra.mxu0 %vm87_vm1, %v446_v2  ;;  %v59_v17 = vld [vmem:[#allocation4 + $0x48] sm:$0xff]  ;;  %v58_v18 = vld [vmem:[#allocation4 + $0x40] sm:$0xff]  ;;  %v57_v19 = vld [vmem:[#allocation4 + $0x38] sm:$0xff] }
  0x23   :  { %385 = vmatpush3.bf16.msra.mxu1 %v448_v4  ;;  %403 = vmatpush3.msra.mxu0 %v65_v11  ;;  %v56_v20 = vld [vmem:[#allocation4 + $0x30] sm:$0xff]  ;;  %v55_v21 = vld [vmem:[#allocation4 + $0x28] sm:$0xff]  ;;  %v54_v22 = vld [vmem:[#allocation4 + $0x20] sm:$0xff] }
  0x24   :  { %386 = vmatprep.subr.bf16.mxu1 %v505_v0  ;;  %404 = vmatprep.subr.mxu0 %v64_v12  ;;  %v333_v23 = vld [vmem:[%s560_s2] ss:$0 sm:$0xff]  ;;  %v53_v33 = vld [vmem:[#allocation4 + $0x18] sm:$0xff]  ;;  %v52_v34 = vld [vmem:[#allocation4 + $0x10] sm:$0xff] }
  0x25   :  { %405 = vmatpush3.msra.mxu0 %v64_v12  ;;  %v51_v35 = vld [vmem:[#allocation4 + $0x8] sm:$0xff]  ;;  %v50_v36 = vld [vmem:[#allocation4] sm:$0xff] }
  0x26   :  { %406 = vmatprep.subr.mxu0 %v63_v13  ;;  %v337_v37 = vld [vmem:[#allocation4 + $0x80] ss:$0 sm:$0xff]  ;;  %v346_v46 = vld [vmem:[#allocation4 + $0x81] ss:$0 sm:$0xff] }
  0x27   :  { %387 = vmatpush3.bf16.msra.mxu1 %v449_v5  ;;  %407 = vmatpush3.msra.mxu0 %v63_v13 }
  0x28   :  { %388 = vmatprep.subr.bf16.mxu1 %v505_v0  ;;  %408 = vmatprep.subr.mxu0 %v62_v14 }
  0x29   :  { %409 = vmatpush3.msra.mxu0 %v62_v14 }
  0x2a   :  { %410 = vmatprep.subr.mxu0 %v61_v15 }
  0x2b   :  { %389 = vmatpush3.bf16.msra.mxu1 %v450_v6  ;;  %411 = vmatpush3.msra.mxu0 %v61_v15 }
  0x2c   :  { %390 = vmatprep.subr.bf16.mxu1 %v505_v0  ;;  %412 = vmatprep.subr.mxu0 %v60_v16 }
  0x2d   :  { %413 = vmatpush3.msra.mxu0 %v60_v16 }
  0x2e   :  { %414 = vmatprep.subr.mxu0 %v59_v17 }
  0x2f   :  { %391 = vmatpush3.bf16.msra.mxu1 %v451_v7  ;;  %415 = vmatpush3.msra.mxu0 %v59_v17 }
  0x30   :  { %392 = vmatprep.subr.bf16.mxu1 %v505_v0  ;;  %416 = vmatprep.subr.mxu0 %v58_v18 }
  0x31   :  { %417 = vmatpush3.msra.mxu0 %v58_v18 }
  0x32   :  { %418 = vmatprep.subr.mxu0 %v57_v19 }
  0x33   :  { %393 = vmatpush3.bf16.msra.mxu1 %v452_v8  ;;  %419 = vmatpush3.msra.mxu0 %v57_v19 }
  0x34   :  { %394 = vmatprep.subr.bf16.mxu1 %v505_v0  ;;  %420 = vmatprep.subr.mxu0 %v56_v20 }
  0x35   :  { %421 = vmatpush3.msra.mxu0 %v56_v20 }
  0x36   :  { %422 = vmatprep.subr.mxu0 %v55_v21 }
  0x37   :  { %395 = vmatpush3.bf16.msra.mxu1 %v453_v9  ;;  %423 = vmatpush3.msra.mxu0 %v55_v21 }
  0x38   :  { %396 = vmatprep.subr.bf16.mxu1 %v505_v0  ;;  %424 = vmatprep.subr.mxu0 %v54_v22 }
  0x39   :  { %425 = vmatpush3.msra.mxu0 %v54_v22 }
  0x3a   :  { %426 = vmatprep.subr.mxu0 %v53_v33 }
  0x3b   :  { %397 = vmatpush3.bf16.msra.mxu1 %v454_v10  ;;  %427 = vmatpush3.msra.mxu0 %v53_v33 }
  0x3c   :  { %428 = vmatprep.subr.mxu0 %v52_v34 }
  0x3d   :  { %429 = vmatpush3.msra.mxu0 %v52_v34 }
  0x3e   :  { %430 = vmatprep.subr.mxu0 %v51_v35 }
  0x3f   :  { %431 = vmatpush3.msra.mxu0 %v51_v35 }
  0x40   :  { %432 = vmatprep.subr.mxu0 %v50_v36 }
  0x41   :  { %433 = vmatpush3.msra.mxu0 %v50_v36 }
  0xe2   :  { %v125_v24 = vpop.f32.mrf.mxu0 }
  0xe3   :  { %v126_v26 = vadd.f32 %v333_v23, %v125_v24 }
  0xe4   :  { %v380_v25 = vpop.f32.mrf.mxu0 }
  0xe5   :  { %v132_v30 = vmax.f32 %v126_v26, 0.0 }
  0xe6   :  { %v128_v27 = vpop.f32.mrf.mxu0 }
  0xe7   :  { %v129_v28 = vadd.f32 %v333_v23, %v128_v27 }
  0xe8   :  { %v381_v29 = vpop.f32.mrf.mxu0 }
  0xe9   :  { %v133_v31 = vmax.f32 %v129_v28, 0.0 }
  0xeb   :  { %v134_v32 = vpack.c.bf16 %v133_v31, %v132_v30 }
  0xed   :  { %399 = vmatmul.mubr.bf16.vlgmr.msra.gmra.mxu1 %v134_v32 }
 0x1ad   :  { %v237_v38 = vpop.f32.mrf.mxu1 }
 0x1ae   :  { %v238_v39 = vadd.f32 %v337_v37, %v237_v38 }
 0x1af   :  { %v400_v40 = vpop.f32.mrf.mxu1 }
 0x1b0   :  { %v244_v41 = vmax.f32 %v238_v39, 0.0 }
 0x1b1   :  { %v240_v42 = vpop.f32.mrf.mxu1 }
 0x1b2   :  { %v241_v43 = vadd.f32 %v337_v37, %v240_v42  ;;  %434 = vmatprep.mubr.f32.mxu0 %v244_v41 }
 0x1b3   :  { %v401_v44 = vpop.f32.mrf.mxu1 }
 0x1b4   :  { %v245_v45 = vmax.f32 %v241_v43, 0.0 }
 0x1b6   :  { %435 = vmatmul.mubr.f32.vlgmr.msra.gmra.mxu0 %v245_v45 }
 0x276   :  { %v436_v47 = vpop.f32.mrf.mxu0 }
 0x277   :  { %v322_v48 = vadd.f32 %v436_v47, %v346_v46 }
 0x278   :  { %v316_v49 = vpop.f32.mrf.mxu0 }
 0x279   :  { %326 = vst [vmem:[%s563_s5 + $0x8] sm:$0xff] %v322_v48  ;;  %v317_v50 = vadd.f32 %v346_v46, %v316_v49 }
 0x27b   :  { %325 = vst [vmem:[%s563_s5] sm:$0xff] %v317_v50 }
 0x27c   :  { %331 = vsyncpa [#allocation3], 1 }
 0x27d   :  { %332 = vsyncpa [#allocation5], 1 }

</bundles_post_ra>
